<compile_context>
chip_gen: v5e
topology: v5e:2x2
jax: 0.10.0
libtpu: 0.0.40
codegen_flags: <defaults>
</compile_context>

<pallas_src>
import math
import functools

import jax
import jax.numpy as jnp
from jax.experimental import pallas as pl
from jax.experimental.pallas import tpu as pltpu


NEG_INF = -1e30  # large-negative mask value (avoids -inf -> NaN on masked rows)


def _vmem_limit_bytes():
    """Generation-aware VMEM window: ~3/4 of physical, capped at 100 MB."""
    try:
        cap = int(pltpu.get_tpu_info().vmem_capacity_bytes)
        return max(32 * 1024 * 1024, min(cap * 3 // 4, 100 * 1024 * 1024))
    except Exception:
        return 48 * 1024 * 1024  # safe everywhere (incl. 64 MiB v7x)


_VMEM_LIMIT = _vmem_limit_bytes()


def _tile(dim, target):
    """Largest MXU-friendly tile <= target that divides `dim`, else the whole dim."""
    if dim <= target:
        return dim
    for t in sorted({target, 1024, 768, 512, 384, 256, 128, 64, 32, 16, 8},
                    reverse=True):
        if t <= target and dim % t == 0:
            return t
    return dim


# ---------------------------------------------------------------------------
# Tiled bf16 matmul with f32 accumulation
# ---------------------------------------------------------------------------

def _matmul_kernel(x_ref, w_ref, o_ref, acc_ref):
    @pl.when(pl.program_id(2) == 0)
    def _():
        acc_ref[...] = jnp.zeros_like(acc_ref)

    acc_ref[...] += jnp.dot(x_ref[...], w_ref[...],
                            preferred_element_type=jnp.float32)

    @pl.when(pl.program_id(2) == pl.num_programs(2) - 1)
    def _():
        o_ref[...] = acc_ref[...].astype(o_ref.dtype)


def matmul(x, w, out_dtype=jnp.bfloat16, *, tm=512, tn=512, tk=1024):
    """x: (M, K), w: (K, N) -> (M, N) in out_dtype (bf16 inputs, f32 acc)."""
    M, K = x.shape
    K2, N = w.shape
    assert K == K2
    tm, tn, tk = _tile(M, tm), _tile(N, tn), _tile(K, tk)
    out_bytes = jnp.dtype(out_dtype).itemsize
    return pl.pallas_call(
        _matmul_kernel,
        out_shape=jax.ShapeDtypeStruct((M, N), out_dtype),
        grid=(M // tm, N // tn, K // tk),
        in_specs=[pl.BlockSpec((tm, tk), lambda i, j, k: (i, k)),
                  pl.BlockSpec((tk, tn), lambda i, j, k: (k, j))],
        out_specs=pl.BlockSpec((tm, tn), lambda i, j, k: (i, j)),
        scratch_shapes=[pltpu.VMEM((tm, tn), jnp.float32)],
        compiler_params=pltpu.CompilerParams(
            dimension_semantics=("parallel", "parallel", "arbitrary"),
            vmem_limit_bytes=_VMEM_LIMIT),
        cost_estimate=pl.CostEstimate(
            flops=2 * M * N * K, transcendentals=0,
            bytes_accessed=M * K * 2 + K * N * 2 + M * N * out_bytes),
    )(x.astype(jnp.bfloat16), w.astype(jnp.bfloat16))


# ---------------------------------------------------------------------------
# Tiled matmul with fused residual-add epilogue:  out = res + x @ w   (f32)
# ---------------------------------------------------------------------------

def _matmul_res_kernel(x_ref, w_ref, r_ref, o_ref, acc_ref):
    @pl.when(pl.program_id(2) == 0)
    def _():
        acc_ref[...] = jnp.zeros_like(acc_ref)

    acc_ref[...] += jnp.dot(x_ref[...], w_ref[...],
                            preferred_element_type=jnp.float32)

    @pl.when(pl.program_id(2) == pl.num_programs(2) - 1)
    def _():
        o_ref[...] = (acc_ref[...] + r_ref[...].astype(jnp.float32)
                      ).astype(o_ref.dtype)


def matmul_residual(x, w, res, out_dtype=jnp.float32, *, tm=512, tn=512, tk=1024):
    """res + x @ w with the residual add fused into the flush epilogue."""
    M, K = x.shape
    K2, N = w.shape
    assert K == K2 and res.shape == (M, N)
    tm, tn, tk = _tile(M, tm), _tile(N, tn), _tile(K, tk)
    out_bytes = jnp.dtype(out_dtype).itemsize
    return pl.pallas_call(
        _matmul_res_kernel,
        out_shape=jax.ShapeDtypeStruct((M, N), out_dtype),
        grid=(M // tm, N // tn, K // tk),
        in_specs=[pl.BlockSpec((tm, tk), lambda i, j, k: (i, k)),
                  pl.BlockSpec((tk, tn), lambda i, j, k: (k, j)),
                  pl.BlockSpec((tm, tn), lambda i, j, k: (i, j))],
        out_specs=pl.BlockSpec((tm, tn), lambda i, j, k: (i, j)),
        scratch_shapes=[pltpu.VMEM((tm, tn), jnp.float32)],
        compiler_params=pltpu.CompilerParams(
            dimension_semantics=("parallel", "parallel", "arbitrary"),
            vmem_limit_bytes=_VMEM_LIMIT),
        cost_estimate=pl.CostEstimate(
            flops=2 * M * N * K + M * N, transcendentals=0,
            bytes_accessed=M * K * 2 + K * N * 2 + M * N * (4 + out_bytes)),
    )(x.astype(jnp.bfloat16), w.astype(jnp.bfloat16), res.astype(jnp.float32))


# ---------------------------------------------------------------------------
# Fused gate/up matmul + SwiGLU epilogue (no HBM round-trip for g and u)
# ---------------------------------------------------------------------------

def _matmul_swiglu_kernel(x_ref, wg_ref, wu_ref, o_ref, accg_ref, accu_ref):
    @pl.when(pl.program_id(2) == 0)
    def _():
        accg_ref[...] = jnp.zeros_like(accg_ref)
        accu_ref[...] = jnp.zeros_like(accu_ref)

    x = x_ref[...]
    accg_ref[...] += jnp.dot(x, wg_ref[...], preferred_element_type=jnp.float32)
    accu_ref[...] += jnp.dot(x, wu_ref[...], preferred_element_type=jnp.float32)

    @pl.when(pl.program_id(2) == pl.num_programs(2) - 1)
    def _():
        g = accg_ref[...]
        o_ref[...] = (g * jax.nn.sigmoid(g) * accu_ref[...]).astype(o_ref.dtype)


def matmul_swiglu(x, w_gate, w_up, out_dtype=jnp.bfloat16, *,
                  tm=512, tn=512, tk=1024):
    """SiLU(x @ w_gate) * (x @ w_up), computed in one pallas_call."""
    M, K = x.shape
    K2, N = w_gate.shape
    assert K == K2 and w_up.shape == (K, N)
    tm, tn, tk = _tile(M, tm), _tile(N, tn), _tile(K, tk)
    return pl.pallas_call(
        _matmul_swiglu_kernel,
        out_shape=jax.ShapeDtypeStruct((M, N), out_dtype),
        grid=(M // tm, N // tn, K // tk),
        in_specs=[pl.BlockSpec((tm, tk), lambda i, j, k: (i, k)),
                  pl.BlockSpec((tk, tn), lambda i, j, k: (k, j)),
                  pl.BlockSpec((tk, tn), lambda i, j, k: (k, j))],
        out_specs=pl.BlockSpec((tm, tn), lambda i, j, k: (i, j)),
        scratch_shapes=[pltpu.VMEM((tm, tn), jnp.float32),
                        pltpu.VMEM((tm, tn), jnp.float32)],
        compiler_params=pltpu.CompilerParams(
            dimension_semantics=("parallel", "parallel", "arbitrary"),
            vmem_limit_bytes=_VMEM_LIMIT),
        cost_estimate=pl.CostEstimate(
            flops=4 * M * N * K + 4 * M * N, transcendentals=M * N,
            bytes_accessed=M * K * 2 + 2 * K * N * 2 + M * N * 2),
    )(x.astype(jnp.bfloat16), w_gate.astype(jnp.bfloat16),
      w_up.astype(jnp.bfloat16))


# ---------------------------------------------------------------------------
# Row-tiled RMSNorm (f32 math, bf16 output for the following matmul)
# ---------------------------------------------------------------------------

def _rmsnorm_kernel(x_ref, w_ref, o_ref, *, eps):
    x = x_ref[...].astype(jnp.float32)
    var = jnp.mean(x * x, axis=-1, keepdims=True)
    y = x * jax.lax.rsqrt(var + eps) * w_ref[...].astype(jnp.float32)
    o_ref[...] = y.astype(o_ref.dtype)


def rmsnorm(x, w, eps, out_dtype=jnp.bfloat16, *, tm=256):
    # tm kept at 256: (tm, H) f32 input double-buffered is the largest per-step
    # VMEM user for big H; do not scale like the matmul tiles on v7x (64 MiB).
    M, D = x.shape
    tm = _tile(M, tm)
    return pl.pallas_call(
        functools.partial(_rmsnorm_kernel, eps=eps),
        out_shape=jax.ShapeDtypeStruct((M, D), out_dtype),
        grid=(M // tm,),
        in_specs=[pl.BlockSpec((tm, D), lambda i: (i, 0)),
                  pl.BlockSpec((1, D), lambda i: (0, 0))],
        out_specs=pl.BlockSpec((tm, D), lambda i: (i, 0)),
        compiler_params=pltpu.CompilerParams(
            dimension_semantics=("parallel",),
            vmem_limit_bytes=_VMEM_LIMIT),
    )(x, w.reshape(1, D))


# ---------------------------------------------------------------------------
# Flash attention: GQA group folded into the block, lower-triangular block
# enumeration (no DMA for fully-masked causal blocks), in-kernel causal mask
# only on diagonal-crossing blocks.
# ---------------------------------------------------------------------------

def _flash_attn_kernel(qi_tbl, ki_tbl, q_ref, k_ref, v_ref, bias_ref, o_ref,
                       m_scr, l_scr, acc_scr, *, tq, tkv, group):
    t = pl.program_id(2)
    qi = qi_tbl[t]
    ki = ki_tbl[t]
    k_hi = ((qi + 1) * tq - 1) // tkv          # last kv block on this query row

    @pl.when(ki == 0)
    def _():
        m_scr[...] = jnp.full_like(m_scr, NEG_INF)
        l_scr[...] = jnp.zeros_like(l_scr)
        acc_scr[...] = jnp.zeros_like(acc_scr)

    def process(apply_causal_mask):
        k = k_ref[0, 0]                        # (tkv, hd) bf16 — fetched ONCE
        v = v_ref[0, 0]                        # (tkv, hd) bf16    per kv block
        bias = bias_ref[0]                     # (1, tkv) f32 padding key bias

        if apply_causal_mask:
            q_pos = qi * tq + jax.lax.broadcasted_iota(jnp.int32, (tq, tkv), 0)
            k_pos = ki * tkv + jax.lax.broadcasted_iota(jnp.int32, (tq, tkv), 1)
            causal_ok = q_pos >= k_pos         # shared across the query group

        # All `group` query heads sharing this KV head reuse the same K/V tile
        # (static unroll keeps every op 2-D and lowering-safe at any head_dim).
        for g in range(group):
            q = q_ref[0, 0, g]                 # (tq, hd) bf16, pre-scaled
            s = jax.lax.dot_general(q, k, (((1,), (1,)), ((), ())),
                                    preferred_element_type=jnp.float32)
            s = s + bias
            if apply_causal_mask:
                s = jnp.where(causal_ok, s, NEG_INF)

            m_prev = m_scr[g]
            m_new = jnp.maximum(m_prev, jnp.max(s, axis=-1, keepdims=True))
            alpha = jnp.exp(m_prev - m_new)
            p = jnp.exp(s - m_new)
            l_scr[g] = alpha * l_scr[g] + jnp.sum(p, axis=-1, keepdims=True)
            acc_scr[g] = alpha * acc_scr[g] + jnp.dot(
                p.astype(v.dtype), v, preferred_element_type=jnp.float32)
            m_scr[g] = m_new

    # Mask ops only on diagonal-crossing blocks; strictly-below blocks skip them.
    needs_mask = (ki * tkv + tkv - 1) > (qi * tq)

    @pl.when(needs_mask)
    def _():
        process(True)

    @pl.when(jnp.logical_not(needs_mask))
    def _():
        process(False)

    @pl.when(ki == k_hi)
    def _():
        inv_l = pl.reciprocal(l_scr[...], approx=True)     # (group, tq, 1)
        # Rows with every key masked (fully padded) output 0 instead of a bogus
        # uniform average of V.
        valid = m_scr[...] > (0.5 * NEG_INF)
        o_ref[0, 0] = jnp.where(valid, acc_scr[...] * inv_l, 0.0
                                ).astype(o_ref.dtype)


def flash_attention(q, k, v, pad_bias, *, tq=512, tkv=256):
    """q: (B, n_kv, group, S, hd) bf16 (pre-scaled by 1/sqrt(hd)),
    k/v: (B, n_kv, S, hd) bf16, pad_bias: (B, 1, S) f32 additive key bias.
    Returns (B, n_kv, group, S, hd) bf16.  tq/tkv should be swept per chip."""
    B, n_kv, group, S, hd = q.shape
    tq = _tile(S, tq)
    tkv = _tile(S, tkv)
    nq = S // tq

    # Lower-triangular (qi, ki) block enumeration: fully-masked causal blocks
    # are never even DMA'd (~2x less K/V HBM traffic than a dense grid).
    qi_list, ki_list = [], []
    for qi in range(nq):
        k_hi = ((qi + 1) * tq - 1) // tkv
        for ki in range(k_hi + 1):
            qi_list.append(qi)
            ki_list.append(ki)
    qi_tbl = jnp.asarray(qi_list, jnp.int32)
    ki_tbl = jnp.asarray(ki_list, jnp.int32)

    kernel = functools.partial(_flash_attn_kernel, tq=tq, tkv=tkv, group=group)
    return pl.pallas_call(
        kernel,
        out_shape=jax.ShapeDtypeStruct((B, n_kv, group, S, hd), q.dtype),
        grid_spec=pltpu.PrefetchScalarGridSpec(
            num_scalar_prefetch=2,
            grid=(B, n_kv, len(qi_list)),
            in_specs=[
                pl.BlockSpec((1, 1, group, tq, hd),
                             lambda b, h, t, qi, ki: (b, h, 0, qi[t], 0)),
                pl.BlockSpec((1, 1, tkv, hd),
                             lambda b, h, t, qi, ki: (b, h, ki[t], 0)),
                pl.BlockSpec((1, 1, tkv, hd),
                             lambda b, h, t, qi, ki: (b, h, ki[t], 0)),
                pl.BlockSpec((1, 1, tkv),
                             lambda b, h, t, qi, ki: (b, 0, ki[t])),
            ],
            out_specs=pl.BlockSpec(
                (1, 1, group, tq, hd),
                lambda b, h, t, qi, ki: (b, h, 0, qi[t], 0)),
            scratch_shapes=[pltpu.VMEM((group, tq, 1), jnp.float32),
                            pltpu.VMEM((group, tq, 1), jnp.float32),
                            pltpu.VMEM((group, tq, hd), jnp.float32)]),
        compiler_params=pltpu.CompilerParams(
            dimension_semantics=("parallel", "parallel", "arbitrary"),
            vmem_limit_bytes=_VMEM_LIMIT),
    )(qi_tbl, ki_tbl, q, k, v, pad_bias)


# ---------------------------------------------------------------------------
# RoPE helpers (plain JAX glue)
# ---------------------------------------------------------------------------

def rope_cos_sin(seq_len, dim, base=10000.0):
    inv_freq = 1.0 / (base ** (jnp.arange(0, dim, 2, dtype=jnp.float32) / dim))
    t = jnp.arange(seq_len, dtype=jnp.float32)
    freqs = jnp.outer(t, inv_freq)                      # (S, dim/2)
    emb = jnp.concatenate([freqs, freqs], axis=-1)      # (S, dim)
    return jnp.cos(emb), jnp.sin(emb)


def rotate_half(x):
    d = x.shape[-1] // 2
    return jnp.concatenate([-x[..., d:], x[..., :d]], axis=-1)


def apply_rope(x, cos, sin):
    # x: (..., S, Dh); cos/sin: (S, Dh) broadcast over leading dims
    xf = x.astype(jnp.float32)
    return xf * cos + rotate_half(xf) * sin


# ---------------------------------------------------------------------------
# Parameter init (deterministic, synthetic) and forward pass
# ---------------------------------------------------------------------------

def init_params(key, cfg):
    H = cfg['hidden_size']
    V = cfg['vocab_size']
    I = cfg['intermediate_size']
    nh = cfg['num_attention_heads']
    nkv = cfg['num_key_value_heads']
    hd = H // nh
    keys = jax.random.split(key, 2 + cfg['num_hidden_layers'])

    def nrm(k, shape, dtype=jnp.bfloat16):
        return (jax.random.normal(k, shape, jnp.float32) * 0.02).astype(dtype)

    params = {
        'embedding': nrm(keys[0], (V, H), jnp.float32),
        'lm_head': nrm(keys[1], (H, V)),                 # stored (in, out), bf16
        'final_norm': jnp.ones((H,), jnp.float32),
        'layers': [],
    }
    for li in range(cfg['num_hidden_layers']):
        lk = jax.random.split(keys[2 + li], 7)
        # fused QKV weight: (H, (nh + 2*nkv) * hd)
        wqkv = jnp.concatenate([nrm(lk[0], (H, nh * hd)),
                                nrm(lk[1], (H, nkv * hd)),
                                nrm(lk[2], (H, nkv * hd))], axis=1)
        params['layers'].append(dict(
            wqkv=wqkv,
            wo=nrm(lk[3], (nh * hd, H)),
            w_gate=nrm(lk[4], (H, I)),
            w_up=nrm(lk[5], (H, I)),
            w_down=nrm(lk[6], (I, H)),
            norm1=jnp.ones((H,), jnp.float32),
            norm2=jnp.ones((H,), jnp.float32),
        ))
    return params


def llama3_forward(params, input_ids, cfg, attention_mask=None):
    B, S = input_ids.shape
    H = cfg['hidden_size']
    nh = cfg['num_attention_heads']
    nkv = cfg['num_key_value_heads']
    group = nh // nkv
    hd = H // nh
    eps = cfg['rms_norm_eps']
    V = cfg['vocab_size']

    # embedding lookup (glue); residual stream kept in f32
    x = jnp.take(params['embedding'], input_ids, axis=0)       # (B, S, H)
    if cfg.get('scale_embeddings', False):
        x = x * math.sqrt(H)

    # padding handled as a (B,1,S) additive key bias; the causal mask is
    # generated inside the attention kernel (no (S,S) mask ever touches HBM).
    if attention_mask is not None:
        pad_bias = jnp.where(attention_mask.astype(bool), 0.0,
                             NEG_INF).astype(jnp.float32)[:, None, :]
    else:
        pad_bias = jnp.zeros((B, 1, S), jnp.float32)

    cos, sin = rope_cos_sin(S, hd)
    scale = 1.0 / math.sqrt(hd)

    for layer in params['layers']:
        # ---- attention sub-block ----
        h_in = rmsnorm(x.reshape(B * S, H), layer['norm1'], eps)        # bf16
        qkv = matmul(h_in, layer['wqkv'])                               # bf16
        # TODO(synk): these head reshapes/transposes are XLA HBM copies;
        # removing them requires head-offset lane blocking in the attention
        # index_maps, which needs hd % 128 == 0 (true for production Llama).
        q = qkv[:, :nh * hd].reshape(B, S, nkv, group, hd).transpose(0, 2, 3, 1, 4)
        k = qkv[:, nh * hd:(nh + nkv) * hd].reshape(B, S, nkv, hd).transpose(0, 2, 1, 3)
        v = qkv[:, (nh + nkv) * hd:].reshape(B, S, nkv, hd).transpose(0, 2, 1, 3)
        q = (apply_rope(q, cos, sin) * scale).astype(jnp.bfloat16)  # fold 1/sqrt(hd)
        k = apply_rope(k, cos, sin).astype(jnp.bfloat16)
        v = v.astype(jnp.bfloat16)

        attn = flash_attention(q, k, v, pad_bias)       # (B, nkv, group, S, hd)
        attn = attn.transpose(0, 3, 1, 2, 4).reshape(B * S, nh * hd)
        # residual add fused into the wo matmul epilogue (f32 residual stream)
        x = matmul_residual(attn, layer['wo'],
                            x.reshape(B * S, H)).reshape(B, S, H)

        # ---- SwiGLU FFN sub-block (gate/up matmuls + SiLU*up fused) ----
        h_in = rmsnorm(x.reshape(B * S, H), layer['norm2'], eps)
        f = matmul_swiglu(h_in, layer['w_gate'], layer['w_up'])         # bf16
        x = matmul_residual(f, layer['w_down'],
                            x.reshape(B * S, H)).reshape(B, S, H)

    # final norm + lm_head
    xn = rmsnorm(x.reshape(B * S, H), params['final_norm'], eps)
    logits = matmul(xn, params['lm_head'], out_dtype=jnp.float32)
    return logits.reshape(B, S, V)


if __name__ == "__main__":
    cfg = dict(
        vocab_size=64,
        hidden_size=32,
        num_attention_heads=4,
        num_key_value_heads=2,
        intermediate_size=64,
        num_hidden_layers=2,
        rms_norm_eps=1e-5,
        scale_embeddings=False,
    )
    key = jax.random.PRNGKey(0)
    pkey, ikey = jax.random.split(key)
    params = init_params(pkey, cfg)

    B, S = 2, 8
    input_ids = jax.random.randint(ikey, (B, S), 0, cfg['vocab_size'])

    logits = llama3_forward(params, input_ids, cfg)
    logits = jax.block_until_ready(logits)
    assert logits.shape == (B, S, cfg['vocab_size'])
    assert bool(jnp.all(jnp.isfinite(logits)))
    print("KERNEL_OK")
</pallas_src>

<mosaic_0001>
module attributes {stable_mosaic.version = 11 : i64} {
  func.func @_rmsnorm_kernel(%arg0: i32, %arg1: memref<16x32xf32, #tpu.memory_space<vmem>>, %arg2: memref<1x32xf32, #tpu.memory_space<vmem>>, %arg3: memref<16x32xbf16, #tpu.memory_space<vmem>>) attributes {dimension_semantics = [#tpu.dimension_semantics<parallel>], iteration_bounds = array<i64: 1>, scalar_prefetch = 0 : i64, scratch_operands = 0 : i64, tpu.core_type = #tpu.core_type<tc>, window_params = [{transform_indices = @transform_0, window_bounds = array<i64: 16, 32>}, {pipeline_mode = #tpu.pipeline_mode<synchronous>, transform_indices = @transform_1, window_bounds = array<i64: 1, 32>}, {transform_indices = @transform_2, window_bounds = array<i64: 16, 32>}]} {
    %c0 = arith.constant 0 : index
    %c0_0 = arith.constant 0 : index
    %0 = vector.load %arg1[%c0, %c0_0] : memref<16x32xf32, #tpu.memory_space<vmem>>, vector<16x32xf32>
    %1 = arith.mulf %0, %0 : vector<16x32xf32>
    %cst = arith.constant dense<0.000000e+00> : vector<16xf32>
    %2 = vector.multi_reduction <add>, %1, %cst [1] : vector<16x32xf32> to vector<16xf32>
    %3 = vector.shape_cast %2 : vector<16xf32> to vector<16x1xf32>
    %cst_1 = arith.constant 3.200000e+01 : f32
    %4 = vector.broadcast %cst_1 : f32 to vector<16x1xf32>
    %5 = arith.divf %3, %4 : vector<16x1xf32>
    %cst_2 = arith.constant 9.99999974E-6 : f32
    %6 = vector.broadcast %cst_2 : f32 to vector<16x1xf32>
    %7 = arith.addf %5, %6 : vector<16x1xf32>
    %8 = math.rsqrt %7 : vector<16x1xf32>
    %9 = vector.broadcast %8 : vector<16x1xf32> to vector<16x32xf32>
    %10 = arith.mulf %0, %9 : vector<16x32xf32>
    %c0_3 = arith.constant 0 : index
    %c0_4 = arith.constant 0 : index
    %11 = vector.load %arg2[%c0_3, %c0_4] : memref<1x32xf32, #tpu.memory_space<vmem>>, vector<1x32xf32>
    %12 = vector.broadcast %11 : vector<1x32xf32> to vector<16x32xf32>
    %13 = arith.mulf %10, %12 : vector<16x32xf32>
    %14 = arith.truncf %13 : vector<16x32xf32> to vector<16x32xbf16>
    %c0_5 = arith.constant 0 : index
    %c0_6 = arith.constant 0 : index
    %15 = vector.load %arg3[%c0_5, %c0_6] : memref<16x32xbf16, #tpu.memory_space<vmem>>, vector<16x32xbf16>
    tpu.vector_store %arg3[%c0_5, %c0_6], %14 {strides = array<i32>} : memref<16x32xbf16, #tpu.memory_space<vmem>>, vector<16x32xbf16>,
    return
  }
  func.func @transform_0(%arg0: i32) -> (i32, i32) {
    %c0_i32 = arith.constant 0 : i32
    %c0_i32_0 = arith.constant 0 : i32
    return %arg0, %c0_i32 : i32, i32
  }
  func.func @transform_1(%arg0: i32) -> (i32, i32) {
    %c0_i32 = arith.constant 0 : i32
    %c0_i32_0 = arith.constant 0 : i32
    %c0_i32_1 = arith.constant 0 : i32
    return %c0_i32, %c0_i32_0 : i32, i32
  }
  func.func @transform_2(%arg0: i32) -> (i32, i32) {
    %c0_i32 = arith.constant 0 : i32
    %c0_i32_0 = arith.constant 0 : i32
    return %arg0, %c0_i32 : i32, i32
  }
}

</mosaic_0001>

<bundles_post_ra>
// kernel: tpu_custom_call.1
= control target key start
LH: loop header
LB: loop body
LE: loop exit
PB: predicated region body
PF: predicated region fallthrough
CT: control target
= control target key end

     0   :  { %7 = vsyncpa [#allocation3], 0  ;;  %s242_s0 = inlined_call_operand.hbm [shape: f32[16,32], index: 0, kind: input, shape index: {}]   ;;  %s243_s1 = inlined_call_operand.hbm [shape: f32[1,32], index: 1, kind: input, shape index: {}]   ;;  %s244_s2 = inlined_call_operand.hbm [shape: bf16[16,32], index: 2, kind: output, shape index: {}]  }
   0x1   :  { %8 = vsyncpa [#allocation6], 0 }
   0x2   :  { %9 = vsyncpa [#allocation4], 0  ;;  %s14_s11 = sshll.u32 %s242_s0, 4  ;;  %s210_s12 = smov [#allocation2]   ;;  %s15_s11 = int_to_ptr.hbm [resolvable:$true] %s14_s11 }
   0x3   :  { %s16_s13 = sshll.u32 %s210_s12, 4  ;;  %s28_s16 = sshll.u32 %s243_s1, 4  ;;  %s17_s13 = int_to_ptr.vmem [resolvable:$true] %s16_s13  ;;  %s29_s16 = int_to_ptr.hbm [resolvable:$true] %s28_s16 }
   0x4   :  { %s211_s17 = smov 128   ;;  %s212_s18 = smov 8  }
   0x5   :  { %22 = dma.hbm_to_vmem [thread:$0]  %s15_s11, 256, %s17_s13, [#allocation3], %s211_s17, %s211_s17, %s212_s18  }
   0x6   :  { %s213_s19 = smov [#allocation5]  }
   0x7   :  { %s30_s20 = sshll.u32 %s213_s19, 4  ;;  %s31_s20 = int_to_ptr.vmem [resolvable:$true] %s30_s20 }
   0x8   :  { %33 = dma.hbm_to_vmem [thread:$0]  %s29_s16, 16, %s31_s20, [#allocation6]  }
   0x9   :  { %204 = dma.done.wait [#allocation3], 256  }
   0xa   :  { %205 = vsyncadd [#allocation3], 4294967040 }
   0xb   :  { %206 = dma.done.wait [#allocation6], 16  }
   0xc   :  { %207 = vsyncadd [#allocation6], 4294967280  ;;  %v42_v0 = vld [vmem:[#allocation2] sm:$0xff]  ;;  %vm46_vm0 = vcmask 261120   ;;  %v43_v2 = vld [vmem:[#allocation2 + $0x8] sm:$0xff]  ;;  %v214_v6 = vmov 32.0  }
   0xd   :  { %v44_v1 = vmul.f32 %v42_v0, %v42_v0  ;;  %v45_v4 = vmul.f32 %v43_v2, %v43_v2  ;;  %126 = vrcp.f32 %v214_v6  ;;  %v125_v27 = vld [vmem:[#allocation5] ss:$0 sm:$0xff]  ;;  %vm94_vm6 = vcmask 257024   ;;  %s215_s0 = smov [#allocation7]   ;;  %s103_s23 = sshll.u32 %s244_s2, 4  ;;  %s104_s23 = int_to_ptr.hbm [resolvable:$true] %s103_s23 }
   0xe   :  { %s101_s1 = sshll.u32 %s215_s0, 4  ;;  %s216_s24 = smov 64   ;;  %s102_s1 = int_to_ptr.vmem [resolvable:$true] %s101_s1 }
   0xf   :  { %v47_v3 = vsel %vm46_vm0, %v44_v1, 0.0  ;;  %v50_v5 = vsel %vm46_vm0, %v45_v4, 0.0  ;;  %s217_s25 = smov 4  }
  0x10   :  { %48 = vadd.xlane.f32.xlu0 %v47_v3 }
  0x13   :  { %v127_v7 = vpop.eup %126 }
  0x14   :  { %v54_v8 = vmul.f32 32.0, %v127_v7  ;;  %vm58_vm1 = vweird.f32 %v127_v7 }
  0x16   :  { %v55_v9 = vsub.f32 1.0, %v54_v8 }
  0x18   :  { %51 = vadd.xlane.f32.xlu0 %v50_v5  ;;  %v56_v10 = vmul.f32 %v127_v7, %v55_v9 }
  0x1a   :  { %v57_v11 = vadd.f32 %v127_v7, %v56_v10 }
  0x1c   :  { %v59_v12 = vsel %vm58_vm1, %v127_v7, %v57_v11 }
  0x83   :  { %v49_v13 = vpop.xlane.xlu0 %48 }
  0x84   :  { %v60_v14 = vmul.f32 %v59_v12, %v49_v13 }
  0x86   :  { %v62_v15 = vadd.f32 1e-05, %v60_v14 }
  0x88   :  { %128 = vrsqrt.f32 %v62_v15  ;;  %vm70_vm3 = vweird.f32 %v62_v15 }
  0x8b   :  { %v52_v16 = vpop.xlane.xlu0 %51 }
  0x8c   :  { %v61_v17 = vmul.f32 %v59_v12, %v52_v16 }
  0x8e   :  { %v129_v18 = vpop.eup %128  ;;  %v63_v19 = vadd.f32 1e-05, %v61_v17 }
  0x8f   :  { %v65_v20 = vmul.f32 %v129_v18, %v62_v15  ;;  %vm71_vm2 = vweird.f32 %v129_v18 }
  0x90   :  { %130 = vrsqrt.f32 %v63_v19  ;;  %vm72_vm4 = vmor %vm70_vm3, %vm71_vm2  ;;  %vm80_vm7 = vweird.f32 %v63_v19 }
  0x91   :  { %v66_v21 = vmul.f32 %v129_v18, %v65_v20 }
  0x93   :  { %v67_v22 = vmul.f32 0.5, %v66_v21 }
  0x95   :  { %v68_v23 = vsub.f32 1.5, %v67_v22 }
  0x96   :  { %v131_v24 = vpop.eup %130 }
  0x97   :  { %v69_v25 = vmul.f32 %v129_v18, %v68_v23  ;;  %v75_v26 = vmul.f32 %v131_v24, %v63_v19  ;;  %vm81_vm5 = vweird.f32 %v131_v24 }
  0x98   :  { %vm82_vm8 = vmor %vm80_vm7, %vm81_vm5 }
  0x99   :  { %v73_v28 = vsel %vm72_vm4, %v129_v18, %v69_v25  ;;  %v76_v29 = vmul.f32 %v131_v24, %v75_v26 }
  0x9a   :  { %v84_v30 = vmul.f32 %v73_v28, %v42_v0 }
  0x9b   :  { %v77_v31 = vmul.f32 0.5, %v76_v29 }
  0x9c   :  { %v90_v32 = vmul.f32 %v125_v27, %v84_v30 }
  0x9d   :  { %v78_v33 = vsub.f32 1.5, %v77_v31 }
  0x9e   :  { %v92_v34 = vpack.c.bf16 %v90_v32, %v90_v32 }
  0x9f   :  { %v79_v35 = vmul.f32 %v131_v24, %v78_v33 }
  0xa0   :  { %95 = vst.msk [vmem:[#allocation7] sm:$0xf] %vm94_vm6, %v92_v34 }
  0xa1   :  { %v83_v36 = vsel %vm82_vm8, %v131_v24, %v79_v35 }
  0xa2   :  { %v85_v37 = vmul.f32 %v83_v36, %v43_v2 }
  0xa4   :  { %v91_v38 = vmul.f32 %v125_v27, %v85_v37 }
  0xa6   :  { %v93_v39 = vpack.c.bf16 %v91_v38, %v91_v38 }
  0xa8   :  { %96 = vst.msk [vmem:[#allocation7 + $0x4] sm:$0xf] %vm94_vm6, %v93_v39 }
  0xa9   :  { %109 = dma.vmem_to_hbm [thread:$0]  %s102_s1, 128, %s104_s23, [#allocation4], %s216_s24, %s216_s24, %s217_s25  }
  0xaa   :  { %208 = dma.done.wait [#allocation4], 128  }
  0xab   :  { %209 = vsyncadd [#allocation4], 4294967168 }
  0xac   :  { %114 = vsyncpa [#allocation3], 1 }
  0xad   :  { %115 = vsyncpa [#allocation6], 1 }
  0xae   :  { %116 = vsyncpa [#allocation4], 1 }

</bundles_post_ra>
